<compile_context>
chip_gen: v7x
topology: tpu7x:2x2x1
jax: 0.10.0
libtpu: 0.0.40
codegen_flags: <defaults>
</compile_context>

<pallas_src>
import functools

import jax
import jax.numpy as jnp
from jax import lax
from jax.experimental import pallas as pl
from jax.experimental.pallas import tpu as pltpu

_MXU_DTYPE = jnp.bfloat16  # operand dtype for all MXU matmuls


def _round_up(v, m):
    return ((v + m - 1) // m) * m


def _pick_tile(n_pad):
    # n_pad is always a multiple of 128; prefer the widest standard tile.
    for t in (512, 256, 128):
        if n_pad % t == 0:
            return t
    return 128  # unreachable


def pam_kernel(x_q_ref, x_k_ref, wb_ref, bb_ref, wcd_ref, bcd_ref, alpha_ref,
               o_ref,
               featb_ref, featc_ref, featd_ref, m_ref, l_ref, acc_ref,
               *, cb_pad, tk, n_valid, mask_keys):
    q = pl.program_id(1)
    k = pl.program_id(2)
    nk = pl.num_programs(2)
    col = pl.multiple_of(k * tk, tk)

    # --- key-side projection cache: filled once per batch, during q == 0 ----
    @pl.when(q == 0)
    def _project_keys():
        xk = x_k_ref[...].astype(_MXU_DTYPE)                           # (C, TK)
        feat_cd = (jnp.dot(wcd_ref[...], xk,
                           preferred_element_type=jnp.float32)
                   + bcd_ref[...])                                     # (Cbp+C, TK)
        featc_ref[:, pl.ds(col, tk)] = feat_cd[:cb_pad, :].astype(_MXU_DTYPE)
        featd_ref[:, pl.ds(col, tk)] = feat_cd[cb_pad:, :].astype(_MXU_DTYPE)

    # --- per-(batch, q-tile) init: conv_b projection + online-softmax state -
    @pl.when(k == 0)
    def _init():
        xq = x_q_ref[...].astype(_MXU_DTYPE)                            # (C, TQ)
        featb_ref[...] = (jnp.dot(wb_ref[...], xq,
                                  preferred_element_type=jnp.float32)
                          + bb_ref[...]).astype(_MXU_DTYPE)             # (Cbp, TQ)
        m_ref[...] = jnp.full(m_ref.shape, -jnp.inf, m_ref.dtype)
        l_ref[...] = jnp.zeros(l_ref.shape, l_ref.dtype)
        acc_ref[...] = jnp.zeros(acc_ref.shape, acc_ref.dtype)

    # --- energy tile, stored transposed: s_t[j,i] = feat_b[:,i].feat_c[:,j] -
    feat_c = featc_ref[:, pl.ds(col, tk)]                               # (Cbp, TK)
    s_t = lax.dot_general(feat_c, featb_ref[...],
                          (((0,), (0,)), ((), ())),
                          preferred_element_type=jnp.float32)           # (TK, TQ)
    if mask_keys:
        key_idx = k * tk + lax.broadcasted_iota(jnp.int32, s_t.shape, 0)
        s_t = jnp.where(key_idx < n_valid, s_t, -jnp.inf)

    # --- online softmax over the key axis (axis 0), f32 math ----------------
    m_prev = m_ref[...]                                                 # (1, TQ)
    m_new = jnp.maximum(m_prev, jnp.max(s_t, axis=0, keepdims=True))
    corr = jnp.exp(m_prev - m_new)
    p_t = jnp.exp(s_t - m_new)                                          # (TK, TQ)
    l_ref[...] = corr * l_ref[...] + jnp.sum(p_t, axis=0, keepdims=True)
    acc_ref[...] = corr * acc_ref[...] + jnp.dot(
        featd_ref[:, pl.ds(col, tk)], p_t.astype(_MXU_DTYPE),
        preferred_element_type=jnp.float32)                             # (C, TQ)
    m_ref[...] = m_new

    # --- epilogue: exact normalize folded with alpha, residual add ----------
    @pl.when(k == nk - 1)
    def _finalize():
        inv = alpha_ref[0] / l_ref[...]                                 # (1, TQ)
        o_ref[...] = (acc_ref[...] * inv
                      + x_q_ref[...].astype(jnp.float32)).astype(o_ref.dtype)


def position_attention(x, wb, bb, wc, bc, wd, bd, alpha, *, tq=None, tk=None):
    """x: (B, C, H, W) f32. wb/wc: (C//8, C); wd: (C, C); biases 1D; alpha scalar."""
    B, C, H, W = x.shape
    N = H * W
    Cb = wb.shape[0]
    cb_pad = max(8, _round_up(Cb, 8))          # reduced channels -> sublane multiple

    n_pad = _round_up(N, 128)                  # lane-dense stores / full MXU passes
    t_def = _pick_tile(n_pad)
    tq = t_def if tq is None else tq
    tk = t_def if tk is None else tk
    assert n_pad % tq == 0 and n_pad % tk == 0, (N, n_pad, tq, tk)
    # Every key tile must hold at least one valid key (pad amount < 128 <= tk).
    assert n_pad - N < tk, (N, n_pad, tk)
    nq, nk = n_pad // tq, n_pad // tk
    needs_mask = n_pad != N

    x_flat = x.reshape(B, C, N)
    if needs_mask:
        x_flat = jnp.pad(x_flat, ((0, 0), (0, 0), (0, n_pad - N)))

    f32 = jnp.float32
    # conv_b weights, zero-padded to cb_pad rows, bf16 MXU operands.
    wb_p = jnp.zeros((cb_pad, C), f32).at[:Cb].set(wb).astype(_MXU_DTYPE)
    bb_p = jnp.zeros((cb_pad, 1), f32).at[:Cb, 0].set(bb)
    # conv_c (zero-padded) stacked on conv_d: one key-side projection matmul.
    w_cd = jnp.concatenate(
        [jnp.zeros((cb_pad, C), f32).at[:Cb].set(wc),
         wd.astype(f32)], axis=0).astype(_MXU_DTYPE)                   # (cb_pad+C, C)
    b_cd = jnp.concatenate(
        [jnp.zeros((cb_pad, 1), f32).at[:Cb, 0].set(bc),
         bd.reshape(C, 1).astype(f32)], axis=0)                        # (cb_pad+C, 1)
    alpha_arr = jnp.asarray(alpha, f32).reshape(1)

    # VMEM working-set estimate -> tight vmem limit (v7x has 64 MiB physical).
    est_bytes = (
        (cb_pad + C) * n_pad * 2               # key-side feature cache (bf16)
        + cb_pad * tq * 2                      # feat_b scratch (bf16)
        + (C + 2) * tq * 4                     # acc + m + l (f32)
        + 2 * C * (tq + tk) * 4                # double-buffered x_q / x_k tiles
        + 2 * C * tq * 4                       # double-buffered output tiles
        + 2 * (2 * cb_pad + C) * (C + 1) * 4   # weights + biases (generous)
        + 4 * tk * tq * 4)                     # score / prob temporaries
    vmem_limit = int(min(40 * 1024 * 1024, max(16 * 1024 * 1024, 2 * est_bytes)))

    cost = pl.CostEstimate(
        flops=int(B * (2 * cb_pad * C * n_pad              # conv_b (once over N)
                       + 2 * (cb_pad + C) * C * n_pad      # conv_c/conv_d (cached)
                       + 2 * cb_pad * n_pad * n_pad        # energy
                       + 2 * C * n_pad * n_pad             # PV
                       + 4 * C * n_pad)),                  # epilogue
        transcendentals=int(B * (n_pad * n_pad + n_pad * nk)),
        bytes_accessed=int(4 * B * C * n_pad * 3           # x (q + k side) + out
                           + 2 * (2 * cb_pad + C) * C      # bf16 weights
                           + 4 * (2 * cb_pad + C)))        # biases

    kernel = functools.partial(pam_kernel, cb_pad=cb_pad, tk=tk,
                               n_valid=N, mask_keys=needs_mask)

    out_flat = pl.pallas_call(
        kernel,
        out_shape=jax.ShapeDtypeStruct((B, C, n_pad), x.dtype),
        grid_spec=pltpu.PrefetchScalarGridSpec(
            num_scalar_prefetch=0,
            grid=(B, nq, nk),
            in_specs=[
                # query-side x tile (resident across the k loop)
                pl.BlockSpec((None, C, tq), lambda b, q, k: (b, 0, q)),
                # key-side x tile: only consumed while q == 0 (cache fill);
                # collapse to block 0 afterwards so it is not re-fetched nq times.
                pl.BlockSpec((None, C, tk),
                             lambda b, q, k: (b, 0, jnp.where(q == 0, k, 0))),
                pl.BlockSpec((cb_pad, C), lambda b, q, k: (0, 0)),       # wb (bf16)
                pl.BlockSpec((cb_pad, 1), lambda b, q, k: (0, 0)),       # bb
                pl.BlockSpec((cb_pad + C, C), lambda b, q, k: (0, 0)),   # [wc; wd] bf16
                pl.BlockSpec((cb_pad + C, 1), lambda b, q, k: (0, 0)),   # [bc; bd]
                pl.BlockSpec(memory_space=pltpu.MemorySpace.SMEM),       # alpha
            ],
            out_specs=pl.BlockSpec((None, C, tq), lambda b, q, k: (b, 0, q)),
            scratch_shapes=[
                pltpu.VMEM((cb_pad, tq), _MXU_DTYPE),    # feat_b, current q tile
                pltpu.VMEM((cb_pad, n_pad), _MXU_DTYPE),  # feat_c cache (whole image)
                pltpu.VMEM((C, n_pad), _MXU_DTYPE),       # feat_d cache (whole image)
                pltpu.VMEM((1, tq), jnp.float32),         # running max
                pltpu.VMEM((1, tq), jnp.float32),         # running sum
                pltpu.VMEM((C, tq), jnp.float32),         # output accumulator
            ]),
        compiler_params=pltpu.CompilerParams(
            # q axis must be "arbitrary": the key-feature cache filled at q==0
            # is reused by later q tiles of the same batch element.
            dimension_semantics=("parallel", "arbitrary", "arbitrary"),
            vmem_limit_bytes=vmem_limit),
        cost_estimate=cost,
    )(x_flat, x_flat, wb_p, bb_p, w_cd, b_cd, alpha_arr)

    if needs_mask:
        out_flat = out_flat[:, :, :N]
    return out_flat.reshape(B, C, H, W)


def position_attention_ref(x, wb, bb, wc, bc, wd, bd, alpha):
    """Pure-JAX f32 reference mirroring the PyTorch forward."""
    B, C, H, W = x.shape
    N = H * W
    xf = x.reshape(B, C, N)
    fb = jnp.einsum("oc,bcn->bon", wb, xf) + bb[None, :, None]   # (B, Cb, N)
    fc = jnp.einsum("oc,bcn->bon", wc, xf) + bc[None, :, None]   # (B, Cb, N)
    fd = jnp.einsum("oc,bcn->bon", wd, xf) + bd[None, :, None]   # (B, C,  N)
    energy = jnp.einsum("bki,bkj->bij", fb, fc)                  # (B, N, N)
    attn = jax.nn.softmax(energy, axis=-1)
    fe = jnp.einsum("bcj,bij->bci", fd, attn)                    # (B, C, N)
    return (alpha * fe + xf).reshape(B, C, H, W)


if __name__ == "__main__":
    B, C, H, W = 2, 16, 16, 16     # C divisible by 8 (conv_b/c: C -> C//8)
    Cb = C // 8

    key = jax.random.PRNGKey(0)
    kx, kwb, kbb, kwc, kbc, kwd, kbd, kx2 = jax.random.split(key, 8)

    x = jax.random.normal(kx, (B, C, H, W), jnp.float32)
    wb = jax.random.normal(kwb, (Cb, C), jnp.float32) * 0.1
    bb = jax.random.normal(kbb, (Cb,), jnp.float32) * 0.1
    wc = jax.random.normal(kwc, (Cb, C), jnp.float32) * 0.1
    bc = jax.random.normal(kbc, (Cb,), jnp.float32) * 0.1
    wd = jax.random.normal(kwd, (C, C), jnp.float32) * 0.1
    bd = jax.random.normal(kbd, (C,), jnp.float32) * 0.1
    # PyTorch init has alpha = 0 (output would trivially equal x); use a
    # nonzero alpha so the attention path is actually exercised.
    alpha = jnp.float32(0.5)

    ref = jax.block_until_ready(
        position_attention_ref(x, wb, bb, wc, bc, wd, bd, alpha))

    # Multi-tile path: exercises online-softmax accumulation across key tiles
    # AND reuse of the cached key projection across query tiles.
    out_tiled = jax.block_until_ready(
        position_attention(x, wb, bb, wc, bc, wd, bd, alpha, tq=128, tk=128))
    assert out_tiled.shape == (B, C, H, W)
    assert jnp.allclose(out_tiled, ref, atol=2e-2, rtol=2e-2), (
        float(jnp.max(jnp.abs(out_tiled - ref))))

    # Default tile heuristic (single 256-wide tile here).
    out_default = jax.block_until_ready(
        position_attention(x, wb, bb, wc, bc, wd, bd, alpha))
    assert jnp.allclose(out_default, ref, atol=2e-2, rtol=2e-2), (
        float(jnp.max(jnp.abs(out_default - ref))))

    # Awkward spatial size: N = 144 -> padded to 256, in-kernel key masking.
    H2 = W2 = 12
    x2 = jax.random.normal(kx2, (B, C, H2, W2), jnp.float32)
    ref2 = jax.block_until_ready(
        position_attention_ref(x2, wb, bb, wc, bc, wd, bd, alpha))
    out_padded = jax.block_until_ready(
        position_attention(x2, wb, bb, wc, bc, wd, bd, alpha))
    assert out_padded.shape == (B, C, H2, W2)
    assert jnp.allclose(out_padded, ref2, atol=2e-2, rtol=2e-2), (
        float(jnp.max(jnp.abs(out_padded - ref2))))

    print("KERNEL_OK")
</pallas_src>

<mosaic_0001>
module attributes {stable_mosaic.version = 11 : i64} {
  func.func @pam_kernel(%arg0: i32, %arg1: i32, %arg2: i32, %arg3: memref<1x16x128xf32, #tpu.memory_space<vmem>>, %arg4: memref<1x16x128xf32, #tpu.memory_space<vmem>>, %arg5: memref<8x16xbf16, #tpu.memory_space<vmem>>, %arg6: memref<8x1xf32, #tpu.memory_space<vmem>>, %arg7: memref<24x16xbf16, #tpu.memory_space<vmem>>, %arg8: memref<24x1xf32, #tpu.memory_space<vmem>>, %arg9: memref<1xf32, #tpu.memory_space<smem>>, %arg10: memref<1x16x128xf32, #tpu.memory_space<vmem>>, %arg11: memref<8x128xbf16, #tpu.memory_space<vmem>>, %arg12: memref<8x256xbf16, #tpu.memory_space<vmem>>, %arg13: memref<16x256xbf16, #tpu.memory_space<vmem>>, %arg14: memref<1x128xf32, #tpu.memory_space<vmem>>, %arg15: memref<1x128xf32, #tpu.memory_space<vmem>>, %arg16: memref<16x128xf32, #tpu.memory_space<vmem>>) attributes {dimension_semantics = [#tpu.dimension_semantics<parallel>, #tpu.dimension_semantics<arbitrary>, #tpu.dimension_semantics<arbitrary>], iteration_bounds = array<i64: 2, 2, 2>, scalar_prefetch = 0 : i64, scratch_operands = 6 : i64, tpu.core_type = #tpu.core_type<tc>, window_params = [{transform_indices = @transform_0, window_bounds = array<i64: 1, 16, 128>}, {transform_indices = @transform_1, window_bounds = array<i64: 1, 16, 128>}, {pipeline_mode = #tpu.pipeline_mode<synchronous>, transform_indices = @transform_2, window_bounds = array<i64: 8, 16>}, {pipeline_mode = #tpu.pipeline_mode<synchronous>, transform_indices = @transform_3, window_bounds = array<i64: 8, 1>}, {pipeline_mode = #tpu.pipeline_mode<synchronous>, transform_indices = @transform_4, window_bounds = array<i64: 24, 16>}, {pipeline_mode = #tpu.pipeline_mode<synchronous>, transform_indices = @transform_5, window_bounds = array<i64: 24, 1>}, {transform_indices = @transform_6, window_bounds = array<i64: 1>}, {transform_indices = @transform_7, window_bounds = array<i64: 1, 16, 128>}]} {
    %c128_i32 = arith.constant 128 : i32
    %0 = arith.muli %arg2, %c128_i32 : i32
    %1 = tpu.assume_multiple %0, 128 : i32
    %c0_i32 = arith.constant 0 : i32
    %2 = arith.cmpi eq, %arg1, %c0_i32 : i32
    %3 = arith.extui %2 : i1 to i32
    %c0_i32_0 = arith.constant 0 : i32
    %4 = arith.cmpi ne, %3, %c0_i32_0 : i32
    scf.if %4 {
      %c0_22 = arith.constant 0 : index
      %c0_23 = arith.constant 0 : index
      %c0_24 = arith.constant 0 : index
      %40 = vector.load %arg4[%c0_22, %c0_23, %c0_24] : memref<1x16x128xf32, #tpu.memory_space<vmem>>, vector<1x16x128xf32>
      %41 = vector.shape_cast %40 : vector<1x16x128xf32> to vector<16x128xf32>
      %42 = arith.truncf %41 : vector<16x128xf32> to vector<16x128xbf16>
      %c0_25 = arith.constant 0 : index
      %c0_26 = arith.constant 0 : index
      %43 = vector.load %arg7[%c0_25, %c0_26] : memref<24x16xbf16, #tpu.memory_space<vmem>>, vector<24x16xbf16>
      %cst_27 = arith.constant dense<0.000000e+00> : vector<24x128xf32>
      %44 = tpu.matmul %43, %42, %cst_27 {dimension_numbers = #tpu.dot_dimension_numbers<[1], [0], [0], [1], [0, 0, 1, 1], [], []>} : vector<24x16xbf16>, vector<16x128xbf16>, vector<24x128xf32> -> vector<24x128xf32>
      %c0_28 = arith.constant 0 : index
      %c0_29 = arith.constant 0 : index
      %45 = vector.load %arg8[%c0_28, %c0_29] : memref<24x1xf32, #tpu.memory_space<vmem>>, vector<24x1xf32>
      %46 = vector.broadcast %45 : vector<24x1xf32> to vector<24x128xf32>
      %47 = arith.addf %44, %46 : vector<24x128xf32>
      %48 = vector.extract_strided_slice %47 {offsets = [0, 0], sizes = [8, 128], strides = [1, 1]} : vector<24x128xf32> to vector<8x128xf32>
      %49 = arith.truncf %48 : vector<8x128xf32> to vector<8x128xbf16>
      %c0_30 = arith.constant 0 : index
      %50 = arith.index_cast %1 : i32 to index
      %51 = vector.load %arg12[%c0_30, %50] : memref<8x256xbf16, #tpu.memory_space<vmem>>, vector<8x128xbf16>
      tpu.vector_store %arg12[%c0_30, %50], %49 {strides = array<i32>} : memref<8x256xbf16, #tpu.memory_space<vmem>>, vector<8x128xbf16>,
      %52 = vector.extract_strided_slice %47 {offsets = [8, 0], sizes = [16, 128], strides = [1, 1]} : vector<24x128xf32> to vector<16x128xf32>
      %53 = arith.truncf %52 : vector<16x128xf32> to vector<16x128xbf16>
      %c0_31 = arith.constant 0 : index
      %54 = arith.index_cast %1 : i32 to index
      %55 = vector.load %arg13[%c0_31, %54] : memref<16x256xbf16, #tpu.memory_space<vmem>>, vector<16x128xbf16>
      tpu.vector_store %arg13[%c0_31, %54], %53 {strides = array<i32>} : memref<16x256xbf16, #tpu.memory_space<vmem>>, vector<16x128xbf16>,
    } else {
    }
    %c0_i32_1 = arith.constant 0 : i32
    %5 = arith.cmpi eq, %arg2, %c0_i32_1 : i32
    %6 = arith.extui %5 : i1 to i32
    %c0_i32_2 = arith.constant 0 : i32
    %7 = arith.cmpi ne, %6, %c0_i32_2 : i32
    scf.if %7 {
      %c0_22 = arith.constant 0 : index
      %c0_23 = arith.constant 0 : index
      %c0_24 = arith.constant 0 : index
      %40 = vector.load %arg3[%c0_22, %c0_23, %c0_24] : memref<1x16x128xf32, #tpu.memory_space<vmem>>, vector<1x16x128xf32>
      %41 = vector.shape_cast %40 : vector<1x16x128xf32> to vector<16x128xf32>
      %42 = arith.truncf %41 : vector<16x128xf32> to vector<16x128xbf16>
      %c0_25 = arith.constant 0 : index
      %c0_26 = arith.constant 0 : index
      %43 = vector.load %arg5[%c0_25, %c0_26] : memref<8x16xbf16, #tpu.memory_space<vmem>>, vector<8x16xbf16>
      %cst_27 = arith.constant dense<0.000000e+00> : vector<8x128xf32>
      %44 = tpu.matmul %43, %42, %cst_27 {dimension_numbers = #tpu.dot_dimension_numbers<[1], [0], [0], [1], [0, 0, 1, 1], [], []>} : vector<8x16xbf16>, vector<16x128xbf16>, vector<8x128xf32> -> vector<8x128xf32>
      %c0_28 = arith.constant 0 : index
      %c0_29 = arith.constant 0 : index
      %45 = vector.load %arg6[%c0_28, %c0_29] : memref<8x1xf32, #tpu.memory_space<vmem>>, vector<8x1xf32>
      %46 = vector.broadcast %45 : vector<8x1xf32> to vector<8x128xf32>
      %47 = arith.addf %44, %46 : vector<8x128xf32>
      %48 = arith.truncf %47 : vector<8x128xf32> to vector<8x128xbf16>
      %c0_30 = arith.constant 0 : index
      %c0_31 = arith.constant 0 : index
      %49 = vector.load %arg11[%c0_30, %c0_31] : memref<8x128xbf16, #tpu.memory_space<vmem>>, vector<8x128xbf16>
      tpu.vector_store %arg11[%c0_30, %c0_31], %48 {strides = array<i32>} : memref<8x128xbf16, #tpu.memory_space<vmem>>, vector<8x128xbf16>,
      %cst_32 = arith.constant 0xFF800000 : f32
      %50 = vector.broadcast %cst_32 : f32 to vector<1x128xf32>
      %c0_33 = arith.constant 0 : index
      %c0_34 = arith.constant 0 : index
      %51 = vector.load %arg14[%c0_33, %c0_34] : memref<1x128xf32, #tpu.memory_space<vmem>>, vector<1x128xf32>
      tpu.vector_store %arg14[%c0_33, %c0_34], %50 {strides = array<i32>} : memref<1x128xf32, #tpu.memory_space<vmem>>, vector<1x128xf32>,
      %cst_35 = arith.constant 0.000000e+00 : f32
      %52 = vector.broadcast %cst_35 : f32 to vector<1x128xf32>
      %c0_36 = arith.constant 0 : index
      %c0_37 = arith.constant 0 : index
      %53 = vector.load %arg15[%c0_36, %c0_37] : memref<1x128xf32, #tpu.memory_space<vmem>>, vector<1x128xf32>
      tpu.vector_store %arg15[%c0_36, %c0_37], %52 {strides = array<i32>} : memref<1x128xf32, #tpu.memory_space<vmem>>, vector<1x128xf32>,
      %cst_38 = arith.constant 0.000000e+00 : f32
      %54 = vector.broadcast %cst_38 : f32 to vector<16x128xf32>
      %c0_39 = arith.constant 0 : index
      %c0_40 = arith.constant 0 : index
      %55 = vector.load %arg16[%c0_39, %c0_40] : memref<16x128xf32, #tpu.memory_space<vmem>>, vector<16x128xf32>
      tpu.vector_store %arg16[%c0_39, %c0_40], %54 {strides = array<i32>} : memref<16x128xf32, #tpu.memory_space<vmem>>, vector<16x128xf32>,
    } else {
    }
    %c0 = arith.constant 0 : index
    %8 = arith.index_cast %1 : i32 to index
    %9 = vector.load %arg12[%c0, %8] : memref<8x256xbf16, #tpu.memory_space<vmem>>, vector<8x128xbf16>
    %c0_3 = arith.constant 0 : index
    %c0_4 = arith.constant 0 : index
    %10 = vector.load %arg11[%c0_3, %c0_4] : memref<8x128xbf16, #tpu.memory_space<vmem>>, vector<8x128xbf16>
    %cst = arith.constant dense<0.000000e+00> : vector<128x128xf32>
    %11 = tpu.matmul %9, %10, %cst {dimension_numbers = #tpu.dot_dimension_numbers<[0], [0], [1], [1], [0, 1, 1, 1], [], []>} : vector<8x128xbf16>, vector<8x128xbf16>, vector<128x128xf32> -> vector<128x128xf32>
    %c0_5 = arith.constant 0 : index
    %c0_6 = arith.constant 0 : index
    %12 = vector.load %arg14[%c0_5, %c0_6] : memref<1x128xf32, #tpu.memory_space<vmem>>, vector<1x128xf32>
    %cst_7 = arith.constant dense<0xFF800000> : vector<128xf32>
    %13 = vector.multi_reduction <maximumf>, %11, %cst_7 [0] : vector<128x128xf32> to vector<128xf32>
    %14 = vector.shape_cast %13 : vector<128xf32> to vector<1x128xf32>
    %15 = arith.maximumf %12, %14 : vector<1x128xf32>
    %16 = arith.subf %12, %15 : vector<1x128xf32>
    %17 = math.exp %16 : vector<1x128xf32>
    %18 = vector.broadcast %15 : vector<1x128xf32> to vector<128x128xf32>
    %19 = arith.subf %11, %18 : vector<128x128xf32>
    %20 = math.exp %19 : vector<128x128xf32>
    %c0_8 = arith.constant 0 : index
    %c0_9 = arith.constant 0 : index
    %21 = vector.load %arg15[%c0_8, %c0_9] : memref<1x128xf32, #tpu.memory_space<vmem>>, vector<1x128xf32>
    %22 = arith.mulf %17, %21 : vector<1x128xf32>
    %cst_10 = arith.constant dense<0.000000e+00> : vector<128xf32>
    %23 = vector.multi_reduction <add>, %20, %cst_10 [0] : vector<128x128xf32> to vector<128xf32>
    %24 = vector.shape_cast %23 : vector<128xf32> to vector<1x128xf32>
    %25 = arith.addf %22, %24 : vector<1x128xf32>
    %c0_11 = arith.constant 0 : index
    %c0_12 = arith.constant 0 : index
    %26 = vector.load %arg15[%c0_11, %c0_12] : memref<1x128xf32, #tpu.memory_space<vmem>>, vector<1x128xf32>
    tpu.vector_store %arg15[%c0_11, %c0_12], %25 {strides = array<i32>} : memref<1x128xf32, #tpu.memory_space<vmem>>, vector<1x128xf32>,
    %c0_13 = arith.constant 0 : index
    %c0_14 = arith.constant 0 : index
    %27 = vector.load %arg16[%c0_13, %c0_14] : memref<16x128xf32, #tpu.memory_space<vmem>>, vector<16x128xf32>
    %28 = vector.broadcast %17 : vector<1x128xf32> to vector<16x128xf32>
    %29 = arith.mulf %28, %27 : vector<16x128xf32>
    %c0_15 = arith.constant 0 : index
    %30 = arith.index_cast %1 : i32 to index
    %31 = vector.load %arg13[%c0_15, %30] : memref<16x256xbf16, #tpu.memory_space<vmem>>, vector<16x128xbf16>
    %32 = arith.truncf %20 : vector<128x128xf32> to vector<128x128xbf16>
    %cst_16 = arith.constant dense<0.000000e+00> : vector<16x128xf32>
    %33 = tpu.matmul %31, %32, %cst_16 {dimension_numbers = #tpu.dot_dimension_numbers<[1], [0], [0], [1], [0, 0, 1, 1], [], []>} : vector<16x128xbf16>, vector<128x128xbf16>, vector<16x128xf32> -> vector<16x128xf32>
    %34 = arith.addf %29, %33 : vector<16x128xf32>
    %c0_17 = arith.constant 0 : index
    %c0_18 = arith.constant 0 : index
    %35 = vector.load %arg16[%c0_17, %c0_18] : memref<16x128xf32, #tpu.memory_space<vmem>>, vector<16x128xf32>
    tpu.vector_store %arg16[%c0_17, %c0_18], %34 {strides = array<i32>} : memref<16x128xf32, #tpu.memory_space<vmem>>, vector<16x128xf32>,
    %c0_19 = arith.constant 0 : index
    %c0_20 = arith.constant 0 : index
    %36 = vector.load %arg14[%c0_19, %c0_20] : memref<1x128xf32, #tpu.memory_space<vmem>>, vector<1x128xf32>
    tpu.vector_store %arg14[%c0_19, %c0_20], %15 {strides = array<i32>} : memref<1x128xf32, #tpu.memory_space<vmem>>, vector<1x128xf32>,
    %c1_i32 = arith.constant 1 : i32
    %37 = arith.cmpi eq, %arg2, %c1_i32 : i32
    %38 = arith.extui %37 : i1 to i32
    %c0_i32_21 = arith.constant 0 : i32
    %39 = arith.cmpi ne, %38, %c0_i32_21 : i32
    scf.if %39 {
      %c0_22 = arith.constant 0 : index
      %40 = memref.load %arg9[%c0_22] : memref<1xf32, #tpu.memory_space<smem>>
      %c0_23 = arith.constant 0 : index
      %c0_24 = arith.constant 0 : index
      %41 = vector.load %arg15[%c0_23, %c0_24] : memref<1x128xf32, #tpu.memory_space<vmem>>, vector<1x128xf32>
      %42 = vector.broadcast %40 : f32 to vector<1x128xf32>
      %43 = arith.divf %42, %41 : vector<1x128xf32>
      %c0_25 = arith.constant 0 : index
      %c0_26 = arith.constant 0 : index
      %44 = vector.load %arg16[%c0_25, %c0_26] : memref<16x128xf32, #tpu.memory_space<vmem>>, vector<16x128xf32>
      %45 = vector.broadcast %43 : vector<1x128xf32> to vector<16x128xf32>
      %46 = arith.mulf %44, %45 : vector<16x128xf32>
      %c0_27 = arith.constant 0 : index
      %c0_28 = arith.constant 0 : index
      %c0_29 = arith.constant 0 : index
      %47 = vector.load %arg3[%c0_27, %c0_28, %c0_29] : memref<1x16x128xf32, #tpu.memory_space<vmem>>, vector<1x16x128xf32>
      %48 = vector.shape_cast %47 : vector<1x16x128xf32> to vector<16x128xf32>
      %49 = arith.addf %46, %48 : vector<16x128xf32>
      %c0_30 = arith.constant 0 : index
      %c0_31 = arith.constant 0 : index
      %c0_32 = arith.constant 0 : index
      %50 = vector.load %arg10[%c0_30, %c0_31, %c0_32] : memref<1x16x128xf32, #tpu.memory_space<vmem>>, vector<1x16x128xf32>
      %51 = vector.shape_cast %50 : vector<1x16x128xf32> to vector<16x128xf32>
      %52 = vector.shape_cast %49 : vector<16x128xf32> to vector<1x16x128xf32>
      tpu.vector_store %arg10[%c0_30, %c0_31, %c0_32], %52 {strides = array<i32>} : memref<1x16x128xf32, #tpu.memory_space<vmem>>, vector<1x16x128xf32>,
    } else {
    }
    return
  }
  func.func @transform_0(%arg0: i32, %arg1: i32, %arg2: i32) -> (i32, i32, i32) {
    %c0_i32 = arith.constant 0 : i32
    %c0_i32_0 = arith.constant 0 : i32
    return %arg0, %c0_i32, %arg1 : i32, i32, i32
  }
  func.func @transform_1(%arg0: i32, %arg1: i32, %arg2: i32) -> (i32, i32, i32) {
    %c0_i32 = arith.constant 0 : i32
    %0 = arith.cmpi eq, %arg1, %c0_i32 : i32
    %c0_i32_0 = arith.constant 0 : i32
    %1 = arith.select %0, %arg2, %c0_i32_0 : i32
    %c0_i32_1 = arith.constant 0 : i32
    %c0_i32_2 = arith.constant 0 : i32
    return %arg0, %c0_i32_1, %1 : i32, i32, i32
  }
  func.func @transform_2(%arg0: i32, %arg1: i32, %arg2: i32) -> (i32, i32) {
    %c0_i32 = arith.constant 0 : i32
    %c0_i32_0 = arith.constant 0 : i32
    %c0_i32_1 = arith.constant 0 : i32
    return %c0_i32, %c0_i32_0 : i32, i32
  }
  func.func @transform_3(%arg0: i32, %arg1: i32, %arg2: i32) -> (i32, i32) {
    %c0_i32 = arith.constant 0 : i32
    %c0_i32_0 = arith.constant 0 : i32
    %c0_i32_1 = arith.constant 0 : i32
    return %c0_i32, %c0_i32_0 : i32, i32
  }
  func.func @transform_4(%arg0: i32, %arg1: i32, %arg2: i32) -> (i32, i32) {
    %c0_i32 = arith.constant 0 : i32
    %c0_i32_0 = arith.constant 0 : i32
    %c0_i32_1 = arith.constant 0 : i32
    return %c0_i32, %c0_i32_0 : i32, i32
  }
  func.func @transform_5(%arg0: i32, %arg1: i32, %arg2: i32) -> (i32, i32) {
    %c0_i32 = arith.constant 0 : i32
    %c0_i32_0 = arith.constant 0 : i32
    %c0_i32_1 = arith.constant 0 : i32
    return %c0_i32, %c0_i32_0 : i32, i32
  }
  func.func @transform_6(%arg0: i32, %arg1: i32, %arg2: i32) -> i32 {
    %c0_i32 = arith.constant 0 : i32
    %c0_i32_0 = arith.constant 0 : i32
    return %c0_i32 : i32
  }
  func.func @transform_7(%arg0: i32, %arg1: i32, %arg2: i32) -> (i32, i32, i32) {
    %c0_i32 = arith.constant 0 : i32
    %c0_i32_0 = arith.constant 0 : i32
    return %arg0, %c0_i32, %arg1 : i32, i32, i32
  }
}

</mosaic_0001>

<bundles_post_ra>
// kernel: tpu_custom_call.1
= control target key start
LH: loop header
LB: loop body
LE: loop exit
PB: predicated region body
PF: predicated region fallthrough
CT: control target
= control target key end

     0   :  { %s2022_s0 = inlined_call_operand.hbm [shape: f32[2,16,256], index: 0, kind: input, shape index: {}]   ;;  %s2023_s1 = inlined_call_operand.hbm [shape: f32[2,16,256], index: 1, kind: input, shape index: {}]   ;;  %s2024_s2 = inlined_call_operand.vmem [shape: bf16[8,16], index: 2, kind: input, shape index: {}]   ;;  %s2025_s3 = inlined_call_operand.vmem [shape: f32[8,1], index: 3, kind: input, shape index: {}]   ;;  %s2026_s4 = inlined_call_operand.vmem [shape: bf16[24,16], index: 4, kind: input, shape index: {}]   ;;  %s2027_s5 = inlined_call_operand.vmem [shape: f32[24,1], index: 5, kind: input, shape index: {}]   ;;  %s2028_s6 = inlined_call_operand.<no memory space> [shape: f32[1], index: 6, kind: input, shape index: {}]   ;;  %s2029_s7 = inlined_call_operand.hbm [shape: f32[2,16,256], index: 7, kind: output, shape index: {}]  }
   0x1   :  { %2053 = sst [smem:[#allocation29_spill]] %s2022_s0 }
   0x2   :  { %2054 = sst [smem:[#allocation30_spill]] %s2024_s2 }
   0x3   :  { %2055 = sst [smem:[#allocation31_spill]] %s2025_s3 }
   0x4   :  { %2056 = sst [smem:[#allocation32_spill]] %s2026_s4 }
   0x5   :  { %2057 = sst [smem:[#allocation33_spill]] %s2027_s5 }
   0x6   :  { %2058 = sst [smem:[#allocation34_spill]] %s2029_s7 }
   0x7   :  { %12 = sst [smem:[#allocation8]] %s2028_s6 }
   0x8   :  { %13 = vsyncpa [#allocation10], 0 }
   0x9   :  { %15 = vsyncpa [#allocation10 + $0x1], 0 }
   0xa   :  { %16 = vsyncpa [#allocation13], 0 }
   0xb   :  { %18 = vsyncpa [#allocation13 + $0x1], 0 }
   0xc   :  { %19 = vsyncpa [#allocation11], 0 }
   0xd   :  { %21 = vsyncpa [#allocation11 + $0x1], 0  ;;  %s1582_s26 = smov 0   ;;  %s1584_s27 = smov 0  }
   0xe   :  { %s1586_s28 = smov 0   ;;  %s1588_s29 = smov 0  }
   0xf   :  { %s1590_s30 = smov 0   ;;  %s1592_s8 = smov 0  }
  0x10   :  { %s1594_s9 = smov 0   ;;  %s1596_s6 = smov 0  }
  0x11   :  { %s1598_s10 = smov 0   ;;  %s1600_s11 = smov 0  }
  0x12   :  { %s1602_s12 = smov 0   ;;  %s1604_s13 = smov 0  }
  0x13   :  { %s1606_s14 = smov 0  }
  0x14 LB: > { %2059 = sst [smem:[#allocation18_spill]] %s1485_s29  ;;  %s1027_s15 = sadd.s32 4294967295, %s1521_s14   ;;  %s1521_s14 = sphi %s1606_s14, %s27_s14   ;;  %s1517_s13 = sphi %s1604_s13, %s2123_s13   ;;  %s1513_s12 = sphi %s1602_s12, %s2114_s12   ;;  %s1509_s11 = sphi %s1600_s11, %s2113_s11   ;;  %s1505_s10 = sphi %s1598_s10, %s2122_s10   ;;  %s1501_s6 = sphi %s1596_s6, %s2112_s6   ;;  %s1497_s9 = sphi %s1594_s9, %s2111_s9   ;;  %s1493_s8 = sphi %s1592_s8, %s2121_s8   ;;  %s1489_s30 = sphi %s1590_s30, %s2120_s30   ;;  %s1485_s29 = sphi %s1588_s29, %s2119_s29   ;;  %s1481_s28 = sphi %s1586_s28, %s2118_s28   ;;  %s1477_s27 = sphi %s1584_s27, %s2117_s27   ;;  %s1473_s26 = sphi %s1582_s26, %s2116_s26  }
  0x15   : > { %2060 = sst [smem:[#allocation19_spill]] %s1497_s9  ;;  %s1028_s16 = sadd.s32 4294967294, %s1521_s14  }
  0x16   : > { %2061 = sst [smem:[#allocation20_spill]] %s1501_s6  ;;  %p62_p0 = scmp.ne.s32.totalorder %s1493_s8, %s1489_s30 }
  0x17   : > { %2062 = sst [smem:[#allocation21_spill]] %s1505_s10  ;;  %p2034_p1 = scmp.eq.s32.totalorder %s1521_s14, 0 }
  0x18   : > { %2063 = sst [smem:[#allocation22_spill]] %s1509_s11  ;;  %p68_p2 = scmp.ne.s32.totalorder %s1489_s30, %s1485_s29 }
  0x19   : > { %2064 = sst [smem:[#allocation23_spill]] %s1513_s12  ;;  %p1655_p3 = scmp.eq.s32.totalorder %s1027_s15, 0 }
  0x1a   : > { %p1661_p4 = por %p2034_p1, %p62_p0  ;;  %p231_p5 = scmp.eq.s32.totalorder %s1027_s15, 7 }
  0x1b   : > { %p1667_p6 = por %p1655_p3, %p68_p2  ;;  %p237_p7 = scmp.eq.s32.totalorder %s1028_s16, 7 }
  0x1c   : > { %p1671_p8 = por %p231_p5, %p62_p0  ;;  %p2033_p10 = scmp.lt.s32.totalorder %s1521_s14, 8 }
  0x1d   : > { %s2067_s20 = scalar_select %p1667_p6, 1, 0 }
  0x1e   : > { %s2068_s21 = scalar_select %p1671_p8, 1, 0 }
  0x1f   : > { %p1675_p9 = por %p237_p7, %p68_p2  ;;  %s272_s23 = sand.u32 1, %s1493_s8  }
  0x20   : > { %2069 = sst [smem:[#allocation24_spill]] %s2068_s21  ;;  %s2040_s24 = sshll.u32 %s1517_s13, 2 }
  0x21   : > { %s2070_s22 = scalar_select %p1675_p9, 1, 0 }
  0x22   : > { %s1031_s25 = sshll.u32 %s272_s23, 4  ;;  %s281_s15 = sadd.s32 %s1513_s12, %s2040_s24 }
  0x23   : > { %2071 = sst [smem:[#allocation25_spill]] %s2070_s22  ;;  %s1033_s17 = sshll.u32 %s281_s15, 7 }
  0x24   : > { %s276_s29 = scalar_lea.vmem [#allocation9], %s1031_s25  ;;  %s2072_s0 = sld [smem:[#allocation29_spill]] }
  0x25   : > { %s284_s7 = sshll.u32 %s276_s29, 4  ;;  %p1696_p11 = pnand %p2033_p10, %p1661_p4  ;;  %s1690_s7 = int_to_ptr.vmem [resolvable:$true] %s284_s7 }
  0x26   : > { %s1701_s29 = scalar_lea.sflag [#allocation10], %s272_s23 }
  0x27   : > { %p1321_p0 = pneg %p1696_p11 }
  0x2a   : > { %s1688_s16 = scalar_lea.hbm %s2072_s0, %s1033_s17  ;;  %s1324_s19 = scalar_lea.hbm %s2072_s0, 1024 }
  0x2b   : > { %s1319_s2 = scalar_lea.hbm %s1688_s16, 256  ;;  %p1325_p4 = scmp.lt.u32.totalorder %s1688_s16, %s2072_s0 }
  0x2c   : > { %p1320_p13 = scmp.ne.s32.totalorder %s1688_s16, %s1319_s2  ;;  %p1326_p7 = scmp.lt.u32.totalorder %s1324_s19, %s1319_s2 }
  0x2d   : > { %p1328_p1 = scmp.lt.u32.totalorder %s1319_s2, %s1688_s16 }
  0x2e   : > { %p1322_p2 = pnand %p1321_p0, %p1320_p13  ;;  %p1327_p10 = por %p1326_p7, %p1325_p4 }
  0x30   : > { %p1323_p5 = pneg %p1322_p2  ;;  %p1329_p12 = por %p1328_p1, %p1327_p10 }
  0x32   : > { %p1330_p9 = pnand %p1329_p12, %p1323_p5 }
  0x34   : > { %1333 = shalt.err (!%p1330_p9)
}
  0x35   : > { %s1334_s23 = scalar_lea.vmem %s1690_s7, 256  ;;  %s1523_s10 = smov [#allocation9]  }
  0x36   : > { %p1335_p13 = scmp.ne.s32.totalorder %s1690_s7, %s1334_s23  ;;  %s1339_s17 = sshll.u32 %s1523_s10, 4  ;;  %s1340_s17 = int_to_ptr.vmem [resolvable:$false] %s1339_s17 }
  0x37   : > { %s1341_s25 = scalar_lea.vmem %s1340_s17, 512  ;;  %p1342_p6 = scmp.lt.s32.totalorder %s1690_s7, %s1340_s17 }
  0x38   : > { %p1337_p2 = pnand %p1335_p13, %p1321_p0  ;;  %p1343_p4 = scmp.lt.s32.totalorder %s1341_s25, %s1334_s23 }
  0x3a   : > { %p1338_p8 = pneg %p1337_p2  ;;  %p1344_p7 = por %p1343_p4, %p1342_p6 }
  0x3c   : > { %p1345_p1 = pnand %p1344_p7, %p1338_p8 }
  0x3e   : > { %1348 = shalt.err (!%p1345_p1)
}
  0x3f   : > { %s2037_s2 = smov 256   ;;  %s2038_s19 = smov 128  }
  0x40   : > { %s2039_s15 = smov 8   ;;  %p316_p6 = scmp.lt.s32.totalorder %s1521_s14, 9 }
  0x41   : > { %1150 = dma.hbm_to_vmem [thread:$0]  (!%p1696_p11), %s1688_s16, 256, %s1690_s7, %s1701_s29, %s2037_s2, %s2038_s19, %s2039_s15  }
  0x42   : > { %p2074_p8 = scmp.ge.s32.totalorder %s1521_s14, 1  ;;  %s39_s17 = sadd.s32 1, %s1509_s11 }
  0x43   : > { %s42_s25 = sadd.s32 1, %s1513_s12  ;;  %p40_p10 = scmp.ge.s32.totalorder %s39_s17, 2 }
  0x44   : > { %p1736_p9 = pnand %p2074_p8, %p316_p6  ;;  %p78_p12 = scmp.eq.s32.totalorder %s1513_s12, 0 }
  0x45   : > { %s87_s22 = sadd.s32 1, %s1481_s28  ;;  %s2125_s17 = smov (%p40_p10, %s39_s17), 0 }
  0x46   : > { %2076 = sst [smem:[#allocation26_spill]] %s2125_s17  ;;  %s2127_s25 = smov (!%p40_p10, %s42_s25), %s1513_s12 }
  0x47   : > { %s79_s7 = scalar_select %p78_p12, %s1509_s11, 0 }
  0x48   : > { %p44_p11 = scmp.ge.s32.totalorder %s2127_s25, 2  ;;  %p94_p0 = scmp.ne.s32.totalorder %s1481_s28, %s1477_s27 }
  0x49   : > { %p100_p5 = scmp.ne.s32.totalorder %s1477_s27, %s1473_s26  ;;  %s294_s16 = sand.u32 1, %s1481_s28  }
  0x4a   : > { %s2129_s25 = smov (%p44_p11, %s2127_s25), 0  ;;  %s2078_s29 = sadd.s32 1, %s1517_s13 }
  0x4b   : > { %2077 = sst [smem:[#allocation27_spill]] %s2129_s25  ;;  %s2131_s29 = smov (!%p44_p11, %s2078_s29), %s1517_s13 }
  0x4c   : > { %s51_s2 = ssub.s32 %s1513_s12, %s2129_s25  ;;  %p80_p13 = scmp.eq.s32.totalorder %s2129_s25, 0 }
  0x4d   : > { %p48_p2 = scmp.ge.s32.totalorder %s2131_s29, 2  ;;  %p1763_p4 = por %p100_p5, %p1655_p3 }
  0x4e   : > { %s81_s26 = scalar_select %p80_p13, %s2125_s17, 0 }
  0x4f   : > { %s2079_s19 = scalar_select %p1763_p4, 1, 0 }
  0x50   : > { %s2133_s29 = smov (%p48_p2, %s2131_s29), 0  ;;  %s83_s15 = ssub.s32 %s79_s7, %s81_s26 }
  0x51   : > { %2080 = sst [smem:[#allocation28_spill]] %s2079_s19  ;;  %p2081_p7 = scmp.eq.s32.totalorder %s1521_s14, 0 }
  0x52   : > { %s50_s24 = ssub.s32 %s1517_s13, %s2133_s29  ;;  %s1034_s0 = sshll.u32 %s294_s16, 4 }
  0x53   : > { %p1772_p1 = por %p94_p0, %p2081_p7  ;;  %s52_s25 = sor.u32 %s51_s2, %s50_s24 }
  0x54   : > { %s84_s18 = sor.u32 %s83_s15, %s50_s24  ;;  %p53_p3 = scmp.eq.s32.totalorder %s52_s25, 0 }
  0x55   : > { %p85_p6 = scmp.eq.s32.totalorder %s84_s18, 0  ;;  %s2083_s12 = sshll.u32 %s1517_s13, 2 }
  0x56   : > { %s305_s11 = sadd.s32 %s2083_s12, %s79_s7  ;;  %s2084_s17 = sadd.s32 1, %s1493_s8 }
  0x57   : > { %s1783_s21 = scalar_select %p53_p3, %s1493_s8, %s2084_s17  }
  0x58   : > { %s1786_s3 = scalar_select %p85_p6, %s1481_s28, %s87_s22  }
  0x59   : > { %s1036_s26 = sshll.u32 %s305_s11, 7  ;;  %s298_s5 = scalar_lea.vmem [#allocation12], %s1034_s0 }
  0x5a   : > { %s308_s4 = sshll.u32 %s298_s5, 4  ;;  %s1791_s19 = scalar_lea.hbm %s2023_s1, %s1036_s26  ;;  %s1793_s4 = int_to_ptr.vmem [resolvable:$true] %s308_s4 }
  0x5b   : > { %p2085_p8 = scmp.lt.s32.totalorder %s1521_s14, 8  ;;  %s1803_s0 = scalar_lea.sflag [#allocation13], %s294_s16 }
  0x5c   : > { %s1349_s5 = scalar_lea.hbm %s1791_s19, 256  ;;  %s1354_s11 = scalar_lea.hbm %s2023_s1, 1024 }
  0x5d   : > { %p1799_p10 = pnand %p2085_p8, %p1772_p1  ;;  %p1350_p12 = scmp.ne.s32.totalorder %s1791_s19, %s1349_s5 }
  0x5e   : > { %p1355_p13 = scmp.lt.u32.totalorder %s1791_s19, %s2023_s1  ;;  %p1356_p2 = scmp.lt.u32.totalorder %s1354_s11, %s1349_s5 }
  0x5f   : > { %p1351_p11 = pneg %p1799_p10  ;;  %p1358_p1 = scmp.lt.u32.totalorder %s1349_s5, %s1791_s19 }
  0x60   : > { %p1357_p7 = por %p1356_p2, %p1355_p13 }
  0x61   : > { %p1352_p0 = pnand %p1351_p11, %p1350_p12 }
  0x62   : > { %p1359_p3 = por %p1358_p1, %p1357_p7 }
  0x63   : > { %p1353_p5 = pneg %p1352_p0 }
  0x65   : > { %p1360_p6 = pnand %p1359_p3, %p1353_p5 }
  0x67   : > { %1363 = shalt.err (!%p1360_p6)
}
  0x68   : > { %s1364_s15 = scalar_lea.vmem %s1793_s4, 256  ;;  %s1527_s23 = smov [#allocation12]  }
  0x69   : > { %p1365_p8 = scmp.ne.s32.totalorder %s1793_s4, %s1364_s15  ;;  %s1369_s17 = sshll.u32 %s1527_s23, 4  ;;  %s1370_s17 = int_to_ptr.vmem [resolvable:$false] %s1369_s17 }
  0x6a   : > { %s1371_s25 = scalar_lea.vmem %s1370_s17, 512  ;;  %p1372_p4 = scmp.lt.s32.totalorder %s1793_s4, %s1370_s17 }
  0x6b   : > { %p1367_p12 = pnand %p1365_p8, %p1351_p11  ;;  %p1373_p13 = scmp.lt.s32.totalorder %s1371_s25, %s1364_s15 }
  0x6d   : > { %p1368_p0 = pneg %p1367_p12  ;;  %p1374_p2 = por %p1373_p13, %p1372_p4 }
  0x6f   : > { %p1375_p7 = pnand %p1374_p2, %p1368_p0 }
  0x71   : > { %1378 = shalt.err (!%p1375_p7)
}
  0x72   : > { %s2087_s22 = smov 8   ;;  %s2088_s7 = smov 128  }
  0x73   : > { %s2089_s16 = smov 256   ;;  %320 = sbr.rel (%p1736_p9) target bundleno = 1281 (0x501), region = 48 }
  0x74   : > { %1153 = dma.hbm_to_vmem [thread:$0]  (!%p1799_p10), %s1791_s19, 256, %s1793_s4, %s1803_s0, %s2089_s16, %s2088_s7, %s2087_s22  }
  0x75   : > { %s1837_s18 = sand.u32 (!%p1736_p9), 1, %s1489_s30   ;;  %p2090_p4 = scmp.ne.s32.totalorder (!%p1736_p9), %s2067_s20, 0 }
  0x76   : > { %s1038_s26 = sshll.u32 (!%p1736_p9), %s1837_s18, 4  ;;  %s323_s5 = scalar_lea.sflag (!%p1736_p9), [#allocation10], %s1837_s18 }
  0x77   : > { %s1841_s9 = scalar_lea.vmem (!%p1736_p9), [#allocation9], %s1038_s26 }
  0x7a   : > { %1460 = dma.done.wait (%p2090_p4), %s323_s5, 256  }
  0x7b   : > { %1462 = vsyncadd (%p2090_p4), %s323_s5, 4294967040  ;;  %s2091_s4 = sld [smem:[#allocation28_spill]]  ;;  %s331_s19 = sand.u32 1, %s1477_s27  }
  0x7c   : > { %s1039_s10 = sshll.u32 %s331_s19, 4  ;;  %s332_s12 = scalar_lea.sflag [#allocation13], %s331_s19 }
  0x7d   : > { %s335_s0 = scalar_lea.vmem [#allocation12], %s1039_s10 }
  0x81   : > { %p2092_p9 = scmp.ne.s32.totalorder %s2091_s4, 0 }
  0x83   : > { %1464 = dma.done.wait (%p2092_p9), %s332_s12, 256  }
  0x84   : > { %1466 = vsyncadd (%p2092_p9), %s332_s12, 4294967040  ;;  %s2093_s6 = sld [smem:[#allocation19_spill]]  ;;  %s1853_s24 = scalar_lea.vmem [#allocation14], %s1038_s26 }
  0x85   : > { %s2094_s2 = sld [smem:[#allocation20_spill]] }
  0x8a   : > { %s1041_s11 = sshll.u32 %s2093_s6, 7 }
  0x8b   : > { %p1042_p10 = scmp.ne.s32.totalorder %s2094_s2, 0 }
  0x8c   : > { %v379_v0 = vld [vmem:[%s335_s0] sm:$0xff] (!%p1042_p10)  ;;  %v380_v1 = vld [vmem:[%s335_s0 + $0x8] sm:$0xff] (!%p1042_p10)  ;;  %vm411_vm0 = vcmask (!%p1042_p10), 130048   ;;  %s2095_s23 = sld [smem:[#allocation32_spill]] (!%p1042_p10)  ;;  %v1528_v4 = vmov (!%p1042_p10), 0   ;;  %s2097_s7 = sld [smem:[#allocation33_spill]] (!%p1042_p10) }
  0x8d   : > { %378 = sbr.rel (%p1042_p10) target bundleno = 368 (0x170), region = 60  ;;  %v381_v2 = vpack.c.bf16 (!%p1042_p10), %v380_v1, %v379_v0  ;;  %1278 = vset.pattern.permute.xlu0 (!%p1042_p10), %v1528_v4  ;;  %1279 = vset.pattern.permute.xlu1 (!%p1042_p10), %v1528_v4  ;;  %s467_s12 = sshra.s32 (!%p1042_p10), %s1041_s11, 7 }
  0x8e   : > { %s1047_s0 = sshll.u32 (!%p1042_p10), %s467_s12, 2  ;;  %s1048_s6 = sshll.u32 (!%p1042_p10), %s467_s12, 3 }
  0x8f   : > { %1090 = vmatprep.subr.bf16.mxu0 (!%p1042_p10), %v381_v2  ;;  %s470_s2 = scalar_lea.vmem (!%p1042_p10), [#allocation3], %s1047_s0  ;;  %s474_s20 = scalar_lea.vmem (!%p1042_p10), [#allocation4], %s1048_s6 }
  0x90   : > { %1091 = vmatpush3.bf16.msra.mxu0 (!%p1042_p10), %v381_v2 }
  0x92   : > { %v1280_v3 = vld [vmem:[%s2095_s23] sm:$0xff] (!%p1042_p10)   ;;  %v1281_v6 = vld [vmem:[%s2095_s23 + $0x8] ss:$0 sps:$4 sm:$0xff] (!%p1042_p10)   ;;  %v387_v7 = vld [vmem:[%s2097_s7 + $0x10] sm:$0xff] (!%p1042_p10) }
  0x93   : > { %v385_v5 = vld [vmem:[%s2097_s7] sm:$0xff] (!%p1042_p10)  ;;  %1092 = vmatprep.mubr.msk.bf16.mxu0 (!%p1042_p10), %vm411_vm0, %v1280_v3  ;;  %v386_v8 = vld [vmem:[%s2097_s7 + $0x8] sm:$0xff] (!%p1042_p10)  ;;  %400 = vperm.xlu1 (!%p1042_p10), %1279, %v387_v7  }
  0x94   : > { %390 = vperm.xlu0 %1278, %v385_v5   ;;  %1093 = vmatmul.mubr.msk.bf16.vlgmr.msra.gmra.mrb[0].mxu0 %vm411_vm0, %v1281_v6 }
  0x98   : > { %395 = vperm.xlu0 %1278, %v386_v8  }
 0x112   : > { %v401_v11 = vpop.permute.xlu1 %400 }
 0x113   : > { %v391_v9 = vpop.permute.xlu0 %390 }
 0x117   : > { %v396_v15 = vpop.permute.xlu0 %395 }
 0x167   : > { %v1094_v10 = vpop.f32.mrb[0].mxu0 }
 0x168   : > { %v452_v12 = vpop.f32.mrb[1].mxu0  ;;  %v461_v17 = vadd.f32 %v1094_v10, %v401_v11 }
 0x169   : > { %v453_v13 = vadd.f32 %v452_v12, %v391_v9  ;;  %v1095_v14 = vpop.f32.mrb[2].mxu0 }
 0x16a   : > { %v455_v16 = vpop.f32.mrb[3].mxu0 }
 0x16b   : > { %v466_v18 = vpack.c.bf16 %v453_v13, %v453_v13  ;;  %v456_v19 = vadd.f32 %v455_v16, %v396_v15 }
 0x16d   : > { %471 = vst [vmem:[%s470_s2] sm:$0xf] %v466_v18  ;;  %v472_v20 = vpack.c.bf16 %v461_v17, %v456_v19 }
 0x16f   : > { %475 = vst [vmem:[%s474_s20] sm:$0xff] %v472_v20 }
 0x170 PF: > { %s2098_s15 = sld [smem:[#allocation19_spill]] }
 0x176   : > { %p1049_p11 = scmp.ne.s32.totalorder %s2098_s15, 0 }
 0x177   : > { %v480_v21 = vld [vmem:[%s1841_s9] sm:$0xff] (!%p1049_p11)  ;;  %v481_v22 = vld [vmem:[%s1841_s9 + $0x8] sm:$0xff] (!%p1049_p11)  ;;  %v1529_v23 = vmov (!%p1049_p11), 0.0   ;;  %vm1530_vm1 = vmmov (!%p1049_p11), 0   ;;  %s2099_s22 = sld [smem:[#allocation31_spill]] (!%p1049_p11)  ;;  %v1531_v26 = vmov (!%p1049_p11), 0  }
 0x178   : > { %479 = sbr.rel (%p1049_p11) target bundleno = 600 (0x258), region = 64  ;;  %1096 = vmatprep.subr.bf16.mxu0 (!%p1049_p11), %v1529_v23  ;;  %537 = vst [vmem:[#allocation6] sm:$0x1] (!%p1049_p11), %v1529_v23  ;;  %538 = vst [vmem:[#allocation7] sm:$0xff] (!%p1049_p11), %v1529_v23  ;;  %v482_v24 = vpack.c.bf16 (!%p1049_p11), %v481_v22, %v480_v21  ;;  %1098 = vmatprep.mubr.msk.bf16.mxu0 (!%p1049_p11), %vm1530_vm1, %v1529_v23  ;;  %s2100_s5 = sld [smem:[#allocation30_spill]] (!%p1049_p11)  ;;  %vm490_vm2 = vcmask (!%p1049_p11), 130048  }
 0x179   : > { %539 = vst [vmem:[#allocation7 + $0x8] sm:$0xff] (!%p1049_p11), %v1529_v23  ;;  %1282 = vset.pattern.permute.xlu0 (!%p1049_p11), %v1531_v26  ;;  %v1532_v28 = vmov (!%p1049_p11), -inf  }
 0x17a   : > { %1097 = vmatpush3.bf16.msra.mxu0 (!%p1049_p11), %v482_v24  ;;  %536 = vst [vmem:[#allocation5] sm:$0x1] (!%p1049_p11), %v1532_v28 }
 0x17d   : > { %v484_v25 = vld [vmem:[%s2099_s22] sm:$0xff] (!%p1049_p11) }
 0x17e   : > { %v483_v27 = vld [vmem:[%s2100_s5] sm:$0xf] (!%p1049_p11)  ;;  %487 = vperm.xlu0 (!%p1049_p11), %1282, %v484_v25  }
 0x17f   : > { %1099 = vmatmul.mubr.msk.bf16.vlgmr.msra.gmra.mrb[0].mxu0 %vm490_vm2, %v483_v27 }
 0x1fd   : > { %v488_v29 = vpop.permute.xlu0 %487 }
 0x252   : > { %v528_v30 = vpop.f32.mrb[0].mxu0 }
 0x253   : > { %v529_v31 = vadd.f32 %v528_v30, %v488_v29  ;;  %v1100_v32 = vpop.f32.mrb[1].mxu0 }
 0x254   : > { %v531_v33 = vpop.f32.mrb[2].mxu0 }
 0x255   : > { %v534_v34 = vpack.c.bf16 %v529_v31, %v529_v31  ;;  %v1101_v35 = vpop.f32.mrb[3].mxu0 }
 0x257   : > { %535 = vst [vmem:[#allocation2] sm:$0xf] %v534_v34 }
 0x258 PF: > { %s2101_s4 = sld [smem:[#allocation19_spill]]  ;;  %s1884_s19 = sshra.s32 %s1041_s11, 7  ;;  %vm587_vm3 = vcmask 1043456   ;;  %vm562_vm4 = vcmask 64512   ;;  %v1533_v47 = vmov 0.0   ;;  %vm1534_vm5 = vmmov 0  }
 0x259   : > { %s1051_s10 = sshll.u32 %s1884_s19, 2  ;;  %1120 = vmatprep.subr.bf16.mxu1 %v1533_v47  ;;  %1136 = vmatprep.mubr.msk.bf16.mxu1 %vm1534_vm5, %v1533_v47  ;;  %v715_v17 = vlaneseq  ;;  %s1060_s11 = sshll.u32 %s1884_s19, 3 }
 0x25a   : > { %s543_s12 = scalar_lea.vmem [#allocation3], %s1051_s10  ;;  %v688_v22 = vld [vmem:[#allocation5] sm:$0x1]  ;;  %s804_s0 = scalar_lea.vmem [#allocation4], %s1060_s11 }
 0x25b   : > { %v544_v38 = vld [vmem:[%s543_s12] sm:$0xf]  ;;  %v716_v20 = vshrl.u32 %v715_v17, 7 }
 0x25c   : > { %546 = vxpose.xlu0.c.b16.start.end [1/1] (short) %v544_v38, 128 }
 0x25d   : > { %v1915_v24 = vsub.s32 0, %v716_v20 }
 0x25e   : > { %v545_v36 = vld [vmem:[#allocation2] sm:$0xf]  ;;  %p1061_p5 = scmp.ne.s32.totalorder %s2101_s4, 1 }
 0x25f   : > { %1140 = vmatprep.subr.msk.bf16.mxu0 %vm587_vm3, %v545_v36  ;;  %v589_v37 = vsel %vm587_vm3, %v545_v36, 0  ;;  %s864_s6 = sld [smem:[#allocation8]] (!%p1061_p5) }
 0x260   : > { %1103 = vmatpush3.bf16.msra.mxu0 %v589_v37 }
 0x2c2   : > { %v554_v39 = vpop.trf.xlu0 }
 0x2c3   : > { %1104 = vmatprep.mubr.msk.bf16.mxu0 %vm562_vm4, %v554_v39 }
 0x2c6   : > { %v555_v40 = vpop.trf.xlu0 }
 0x2c7   : > { %1105 = vmatmul.mubr.msk.bf16.vlgmr.msra.gmra.mrb[0].mxu0 %vm562_vm4, %v555_v40 }
 0x2ca   : > { %v556_v41 = vpop.trf.xlu0 }
 0x2cb   : > { %1108 = vmatprep.mubr.msk.bf16.mxu0 %vm562_vm4, %v556_v41 }
 0x2ce   : > { %v557_v42 = vpop.trf.xlu0 }
 0x2cf   : > { %1109 = vmatmul.mubr.msk.bf16.gmra.mrb[4].mxu0 %vm562_vm4, %v557_v42 }
 0x2d2   : > { %v558_v43 = vpop.trf.xlu0 }
 0x2d3   : > { %1112 = vmatprep.mubr.msk.bf16.mxu0 %vm562_vm4, %v558_v43 }
 0x2d6   : > { %v559_v44 = vpop.trf.xlu0 }
 0x2d7   : > { %1113 = vmatmul.mubr.msk.bf16.gmra.mrb[8].mxu0 %vm562_vm4, %v559_v44 }
 0x2da   : > { %v560_v45 = vpop.trf.xlu0 }
 0x2db   : > { %1116 = vmatprep.mubr.msk.bf16.mxu0 %vm562_vm4, %v560_v45 }
 0x2de   : > { %v561_v46 = vpop.trf.xlu0 }
 0x2df   : > { %1117 = vmatmul.mubr.msk.bf16.gmra.mrb[12].mxu0 %vm562_vm4, %v561_v46 }
 0x39a   : > { %v1106_v48 = vpop.f32.mrb[0].mxu0 }
 0x39b   : > { %v625_v49 = vpop.f32.mrb[1].mxu0 }
 0x39c   : > { %v1107_v50 = vpop.f32.mrb[2].mxu0 }
 0x39d   : > { %v628_v51 = vpop.f32.mrb[3].mxu0 }
 0x3a2   : > { %v1897_v52 = vpop.f32.mrb[4].mxu0 }
 0x3a3   : > { %v691_v53 = vmax.f32 %v1106_v48, %v1897_v52  ;;  %v641_v54 = vpop.f32.mrb[5].mxu0 }
 0x3a4   : > { %v689_v55 = vmax.f32 %v625_v49, %v641_v54  ;;  %v1900_v56 = vpop.f32.mrb[6].mxu0 }
 0x3a5   : > { %v692_v57 = vmax.f32 %v1107_v50, %v1900_v56  ;;  %v644_v58 = vpop.f32.mrb[7].mxu0 }
 0x3a6   : > { %v690_v59 = vmax.f32 %v628_v51, %v644_v58 }
 0x3aa   : > { %v1903_v60 = vpop.f32.mrb[8].mxu0 }
 0x3ab   : > { %v695_v61 = vmax.f32 %v691_v53, %v1903_v60  ;;  %v657_v62 = vpop.f32.mrb[9].mxu0 }
 0x3ac   : > { %v693_v63 = vmax.f32 %v689_v55, %v657_v62  ;;  %v1906_v0 = vpop.f32.mrb[10].mxu0 }
 0x3ad   : > { %v696_v1 = vmax.f32 %v692_v57, %v1906_v0  ;;  %v660_v2 = vpop.f32.mrb[11].mxu0 }
 0x3ae   : > { %v694_v3 = vmax.f32 %v690_v59, %v660_v2 }
 0x3b2   : > { %v1909_v4 = vpop.f32.mrb[12].mxu0 }
 0x3b3   : > { %v699_v5 = vmax.f32 %v695_v61, %v1909_v4  ;;  %v673_v6 = vpop.f32.mrb[13].mxu0 }
 0x3b4   : > { %v697_v7 = vmax.f32 %v693_v63, %v673_v6  ;;  %v1912_v8 = vpop.f32.mrb[14].mxu0 }
 0x3b5   : > { %v700_v9 = vmax.f32 %v696_v1, %v1912_v8  ;;  %v676_v10 = vpop.f32.mrb[15].mxu0 }
 0x3b6   : > { %v698_v11 = vmax.f32 %v694_v3, %v676_v10 }
 0x3b7   : > { %v702_v12 = vmax.f32 %v699_v5, %v700_v9 }
 0x3b8   : > { %v701_v13 = vmax.f32 %v697_v7, %v698_v11 }
 0x3ba   : > { %v703_v14 = vmax.f32 %v701_v13, %v702_v12 }
 0x3bc   : > { %v704_v15 = vrot.slane %v703_v14, 4 }
 0x3be   : > { %v705_v16 = vmax.f32 %v703_v14, %v704_v15 }
 0x3c0   : > { %v706_v18 = vrot.slane %v705_v16, 2 }
 0x3c2   : > { %v707_v19 = vmax.f32 %v705_v16, %v706_v18 }
 0x3c4   : > { %v708_v21 = vrot.slane %v707_v19, 1 }
 0x3c6   : > { %v709_v23 = vmax.f32 %v707_v19, %v708_v21 }
 0x3c8   : > { %v710_v25 = vmax.f32 %v688_v22, %v709_v23 }
 0x3ca   : > { %v718_v26 = vrot.slane %v710_v25, %v1915_v24  ;;  %859 = vst [vmem:[#allocation5] sm:$0x1] %v710_v25  ;;  %v711_v57 = vsub.f32 %v688_v22, %v710_v25 }
 0x3cc   : > { %v720_v27 = vsub.f32 %v625_v49, %v718_v26  ;;  %v721_v28 = vsub.f32 %v628_v51, %v718_v26  ;;  %v722_v29 = vsub.f32 %v1106_v48, %v718_v26  ;;  %v723_v30 = vsub.f32 %v1107_v50, %v718_v26 }
 0x3cd   : > { %v724_v31 = vsub.f32 %v641_v54, %v718_v26  ;;  %v725_v32 = vsub.f32 %v644_v58, %v718_v26  ;;  %v726_v33 = vsub.f32 %v1897_v52, %v718_v26  ;;  %v727_v34 = vsub.f32 %v1900_v56, %v718_v26 }
 0x3ce   : > { %v728_v35 = vsub.f32 %v657_v62, %v718_v26  ;;  %v729_v36 = vsub.f32 %v660_v2, %v718_v26  ;;  %v730_v37 = vsub.f32 %v1903_v60, %v718_v26  ;;  %v731_v38 = vsub.f32 %v1906_v0, %v718_v26 }
 0x3cf   : > { %v732_v39 = vsub.f32 %v673_v6, %v718_v26  ;;  %v733_v40 = vsub.f32 %v676_v10, %v718_v26  ;;  %v734_v41 = vsub.f32 %v1909_v4, %v718_v26  ;;  %v736_v42 = vmul.f32 1.442695, %v720_v27 }
 0x3d0   : > { %v738_v43 = vmul.f32 1.442695, %v721_v28  ;;  %v740_v44 = vmul.f32 1.442695, %v722_v29  ;;  %v742_v45 = vmul.f32 1.442695, %v723_v30  ;;  %v735_v46 = vsub.f32 %v1912_v8, %v718_v26 }
 0x3d1   : > { %1283 = vpow2.f32 %v736_v42  ;;  %v744_v48 = vmul.f32 1.442695, %v724_v31  ;;  %v746_v49 = vmul.f32 1.442695, %v725_v32  ;;  %v748_v50 = vmul.f32 1.442695, %v726_v33 }
 0x3d2   : > { %1285 = vpow2.f32 %v738_v43  ;;  %v750_v51 = vmul.f32 1.442695, %v727_v34  ;;  %v752_v52 = vmul.f32 1.442695, %v728_v35  ;;  %v754_v53 = vmul.f32 1.442695, %v729_v36 }
 0x3d3   : > { %1287 = vpow2.f32 %v740_v44  ;;  %v756_v54 = vmul.f32 1.442695, %v730_v37  ;;  %v758_v55 = vmul.f32 1.442695, %v731_v38  ;;  %v760_v56 = vmul.f32 1.442695, %v732_v39 }
 0x3d4   : > { %1289 = vpow2.f32 %v742_v45  ;;  %v762_v58 = vmul.f32 1.442695, %v733_v40  ;;  %v764_v60 = vmul.f32 1.442695, %v734_v41  ;;  %v766_v62 = vmul.f32 1.442695, %v735_v46 }
 0x3d5   : > { %1291 = vpow2.f32 %v744_v48  ;;  %v712_v2 = vmul.f32 1.442695, %v711_v57  ;;  %v805_v41 = vld [vmem:[%s804_s0] sm:$0xff]  ;;  %v768_v45 = vld [vmem:[#allocation6] sm:$0x1] }
 0x3d6   : > { %1293 = vpow2.f32 %v746_v49 }
 0x3d7   : > { %1295 = vpow2.f32 %v748_v50 }
 0x3d8   : > { %1297 = vpow2.f32 %v750_v51  ;;  %v793_v51 = vld [vmem:[#allocation7] sm:$0xff] }
 0x3d9   : > { %1299 = vpow2.f32 %v752_v52  ;;  %v794_v52 = vld [vmem:[#allocation7 + $0x8] sm:$0xff] }
 0x3da   : > { %1301 = vpow2.f32 %v754_v53 }
 0x3db   : > { %v1284_v59 = vpop.eup %1283  ;;  %1303 = vpow2.f32 %v756_v54 }
 0x3dc   : > { %v1286_v61 = vpop.eup %1285  ;;  %1305 = vpow2.f32 %v758_v55 }
 0x3dd   : > { %v1288_v63 = vpop.eup %1287  ;;  %1307 = vpow2.f32 %v760_v56  ;;  %v770_v0 = vadd.f32 %v1286_v61, %v1284_v59  ;;  %v806_v1 = vpack.c.bf16 %v1286_v61, %v1284_v59  ;;  %v866_v61 = vstv (!%p1061_p5), %s864_s6 }
 0x3de   : > { %v1290_v3 = vpop.eup %1289  ;;  %1309 = vpow2.f32 %v762_v58 }
 0x3df   : > { %v1292_v4 = vpop.eup %1291  ;;  %1311 = vpow2.f32 %v764_v60  ;;  %v771_v5 = vadd.f32 %v1288_v63, %v770_v0  ;;  %1121 = vmatpush3.bf16.msra.mxu1 %v806_v1  ;;  %v807_v6 = vpack.c.bf16 %v1290_v3, %v1288_v63 }
 0x3e0   : > { %v1294_v7 = vpop.eup %1293  ;;  %1122 = vmatprep.subr.bf16.mxu1 %v1533_v47  ;;  %1313 = vpow2.f32 %v766_v62 }
 0x3e1   : > { %v1296_v8 = vpop.eup %1295  ;;  %v772_v9 = vadd.f32 %v1290_v3, %v771_v5  ;;  %v808_v10 = vpack.c.bf16 %v1294_v7, %v1292_v4  ;;  %1315 = vpow2.f32 %v712_v2  ;;  %v879_v3 = vld [vmem:[%s1841_s9] sm:$0xff] (!%p1061_p5) }
 0x3e2   : > { %v1298_v11 = vpop.eup %1297 }
 0x3e3   : > { %v1300_v12 = vpop.eup %1299  ;;  %v773_v13 = vadd.f32 %v1292_v4, %v772_v9  ;;  %1123 = vmatpush3.bf16.msra.mxu1 %v807_v6  ;;  %v809_v14 = vpack.c.bf16 %v1298_v11, %v1296_v8  ;;  %v880_v4 = vld [vmem:[%s1841_s9 + $0x8] sm:$0xff] (!%p1061_p5) }
 0x3e4   : > { %v1302_v15 = vpop.eup %1301  ;;  %1124 = vmatprep.subr.bf16.mxu1 %v1533_v47 }
 0x3e5   : > { %v1304_v16 = vpop.eup %1303  ;;  %v774_v17 = vadd.f32 %v1294_v7, %v773_v13  ;;  %v810_v18 = vpack.c.bf16 %v1302_v15, %v1300_v12 }
 0x3e6   : > { %v1306_v19 = vpop.eup %1305 }
 0x3e7   : > { %v1308_v20 = vpop.eup %1307  ;;  %v775_v21 = vadd.f32 %v1296_v8, %v774_v17  ;;  %1125 = vmatpush3.bf16.msra.mxu1 %v808_v10  ;;  %v811_v22 = vpack.c.bf16 %v1306_v19, %v1304_v16 }
 0x3e8   : > { %v1310_v23 = vpop.eup %1309  ;;  %1126 = vmatprep.subr.bf16.mxu1 %v1533_v47 }
 0x3e9   : > { %v1312_v25 = vpop.eup %1311  ;;  %v776_v26 = vadd.f32 %v1298_v11, %v775_v21  ;;  %v812_v27 = vpack.c.bf16 %v1310_v23, %v1308_v20 }
 0x3ea   : > { %v1314_v28 = vpop.eup %1313 }
 0x3eb   : > { %v1316_v29 = vpop.eup %1315  ;;  %v777_v30 = vadd.f32 %v1300_v12, %v776_v26  ;;  %1127 = vmatpush3.bf16.msra.mxu1 %v809_v14  ;;  %v813_v31 = vpack.c.bf16 %v1314_v28, %v1312_v25 }
 0x3ec   : > { %1128 = vmatprep.subr.bf16.mxu1 %v1533_v47  ;;  %v799_v32 = vrot.slane %v1316_v29, %v1915_v24  ;;  %v769_v49 = vmul.f32 %v1316_v29, %v768_v45 }
 0x3ed   : > { %v778_v33 = vadd.f32 %v1302_v15, %v777_v30 }
 0x3ee   : > { %v801_v53 = vmul.f32 %v799_v32, %v793_v51  ;;  %v802_v56 = vmul.f32 %v799_v32, %v794_v52 }
 0x3ef   : > { %v779_v34 = vadd.f32 %v1304_v16, %v778_v33  ;;  %1129 = vmatpush3.bf16.msra.mxu1 %v810_v18 }
 0x3f0   : > { %1130 = vmatprep.subr.bf16.mxu1 %v1533_v47 }
 0x3f1   : > { %v780_v35 = vadd.f32 %v1306_v19, %v779_v34 }
 0x3f3   : > { %v781_v36 = vadd.f32 %v1308_v20, %v780_v35  ;;  %1131 = vmatpush3.bf16.msra.mxu1 %v811_v22 }
 0x3f4   : > { %1132 = vmatprep.subr.bf16.mxu1 %v1533_v47 }
 0x3f5   : > { %v782_v37 = vadd.f32 %v1310_v23, %v781_v36 }
 0x3f7   : > { %v783_v38 = vadd.f32 %v1312_v25, %v782_v37  ;;  %1133 = vmatpush3.bf16.msra.mxu1 %v812_v27 }
 0x3f8   : > { %1134 = vmatprep.subr.bf16.mxu1 %v1533_v47 }
 0x3f9   : > { %v784_v39 = vadd.f32 %v1314_v28, %v783_v38 }
 0x3fb   : > { %v785_v40 = vrot.slane %v784_v39, 4  ;;  %1135 = vmatpush3.bf16.msra.mxu1 %v813_v31 }
 0x3fd   : > { %v786_v42 = vadd.f32 %v785_v40, %v784_v39 }
 0x3fe   : > { %1137 = vmatmul.mubr.bf16.vlgmr.msra.gmra.mrb[0].mxu1 %v805_v41 }
 0x3ff   : > { %v787_v43 = vrot.slane %v786_v42, 2 }
 0x401   : > { %v788_v44 = vadd.f32 %v787_v43, %v786_v42 }
 0x403   : > { %v789_v46 = vrot.slane %v788_v44, 1 }
 0x405   : > { %v790_v48 = vadd.f32 %v789_v46, %v788_v44 }
 0x407   : > { %v791_v50 = vadd.f32 %v790_v48, %v769_v49 }
 0x409   : > { %792 = vst [vmem:[#allocation6] sm:$0x1] %v791_v50 }
 0x410   : > { %v865_v60 = vld [vmem:[#allocation6] sm:$0x1] (!%p1061_p5) }
 0x411   : > { %1317 = vrcp.f32 (!%p1061_p5), %v865_v60 }
 0x41b   : > { %v1318_v62 = vpop.eup (!%p1061_p5), %1317 }
 0x41c   : > { %v868_v63 = vmul.f32 (!%p1061_p5), %v1318_v62, %v866_v61 }
 0x41e   : > { %v875_v2 = vrot.slane (!%p1061_p5), %v868_v63, %v1915_v24 }
 0x4d0   : > { %863 = sbr.rel (%p1061_p5) target bundleno = 1251 (0x4e3), region = 68 }
 0x4d1   : > { %v848_v54 = vpop.f32.mrb[0].mxu1 }
 0x4d2   : > { %v855_v47 = vadd.f32 %v848_v54, %v801_v53  ;;  %v1138_v55 = vpop.f32.mrb[1].mxu1 }
 0x4d3   : > { %v851_v57 = vpop.f32.mrb[2].mxu1 }
 0x4d4   : > { %857 = vst [vmem:[#allocation7] sm:$0xff] %v855_v47  ;;  %v856_v58 = vadd.f32 %v851_v57, %v802_v56  ;;  %v1139_v59 = vpop.f32.mrb[3].mxu1 }
 0x4d6   : > { %858 = vst [vmem:[#allocation7 + $0x8] sm:$0xff] %v856_v58 }
 0x4db   : > { %v869_v0 = vld [vmem:[#allocation7] sm:$0xff] }
 0x4dc   : > { %v877_v5 = vmul.f32 %v875_v2, %v869_v0 }
 0x4dd   : > { %v870_v1 = vld [vmem:[#allocation7 + $0x8] sm:$0xff] }
 0x4de   : > { %v878_v6 = vmul.f32 %v875_v2, %v870_v1  ;;  %v881_v7 = vadd.f32 %v879_v3, %v877_v5 }
 0x4e0   : > { %v882_v8 = vadd.f32 %v880_v4, %v878_v6  ;;  %883 = vst [vmem:[%s1853_s24] sm:$0xff] %v881_v7 }
 0x4e2   : > { %884 = vst [vmem:[%s1853_s24 + $0x8] sm:$0xff] %v882_v8 }
 0x4e3 PF: > { %s2102_s2 = sld [smem:[#allocation21_spill]]  ;;  %s2103_s20 = sld [smem:[#allocation20_spill]] }
 0x4e4   : > { %s2104_s15 = sld [smem:[#allocation24_spill]]  ;;  %s900_s22 = sshll.u32 %s1853_s24, 4  ;;  %s1942_s22 = int_to_ptr.vmem [resolvable:$true] %s900_s22 }
 0x4e5   : > { %s2105_s5 = sld [smem:[#allocation34_spill]]  ;;  %s886_s19 = scalar_lea.sflag [#allocation11], %s1837_s18 }
 0x4e6   : > { %s1379_s10 = scalar_lea.vmem %s1942_s22, 256  ;;  %s1535_s12 = smov [#allocation14]  }
 0x4e7   : > { %p1380_p1 = scmp.ne.s32.totalorder %s1942_s22, %s1379_s10  ;;  %s1383_s11 = sshll.u32 %s1535_s12, 4  ;;  %s1384_s11 = int_to_ptr.vmem [resolvable:$false] %s1383_s11 }
 0x4e8   : > { %s1385_s24 = scalar_lea.vmem %s1384_s11, 512  ;;  %p1386_p12 = scmp.lt.s32.totalorder %s1942_s22, %s1384_s11 }
 0x4e9   : > { %s1063_s17 = sshll.u32 %s2102_s2, 2  ;;  %p1387_p0 = scmp.lt.s32.totalorder %s1385_s24, %s1379_s10 }
 0x4ea   : > { %s897_s25 = sadd.s32 %s2103_s20, %s1063_s17  ;;  %p2106_p3 = scmp.ne.s32.totalorder %s2104_s15, 0 }
 0x4eb   : > { %s1064_s16 = sshll.u32 %s897_s25, 7  ;;  %p1388_p13 = por %p1387_p0, %p1386_p12 }
 0x4ec   : > { %s1947_s4 = scalar_lea.hbm %s2105_s5, %s1064_s16  ;;  %p1381_p6 = pnand %p1380_p1, %p2106_p3 }
 0x4ee   : > { %p1382_p8 = pneg %p1381_p6 }
 0x4f0   : > { %p1389_p2 = pnand %p1388_p13, %p1382_p8 }
 0x4f2   : > { %1392 = shalt.err (!%p1389_p2)
}
 0x4f3   : > { %s1393_s0 = scalar_lea.hbm %s1947_s4, 256  ;;  %s1397_s20 = scalar_lea.hbm %s2105_s5, 1024 }
 0x4f4   : > { %p1394_p7 = scmp.ne.s32.totalorder %s1947_s4, %s1393_s0  ;;  %p1398_p10 = scmp.lt.u32.totalorder %s1947_s4, %s2105_s5 }
 0x4f5   : > { %p1399_p11 = scmp.lt.u32.totalorder %s1397_s20, %s1393_s0  ;;  %p1401_p1 = scmp.lt.u32.totalorder %s1393_s0, %s1947_s4 }
 0x4f6   : > { %p1395_p4 = pnand %p1394_p7, %p2106_p3 }
 0x4f7   : > { %p1400_p5 = por %p1399_p11, %p1398_p10 }
 0x4f8   : > { %p1396_p9 = pneg %p1395_p4 }
 0x4f9   : > { %p1402_p6 = por %p1401_p1, %p1400_p5 }
 0x4fb   : > { %p1403_p8 = pnand %p1402_p6, %p1396_p9 }
 0x4fd   : > { %1406 = shalt.err (!%p1403_p8)
}
 0x4fe   : > { %s1536_s16 = smov 128   ;;  %s1537_s26 = smov 256  }
 0x4ff   : > { %s1538_s9 = smov 8  }
 0x500   : > { %1145 = dma.vmem_to_hbm [thread:$0]  (%p2106_p3), %s1942_s22, 256, %s1947_s4, %s886_s19, %s1536_s16, %s1537_s26, %s1538_s9  }
 0x501 PF: > { %s2107_s10 = sld [smem:[#allocation18_spill]]  ;;  %s2108_s12 = sld [smem:[#allocation25_spill]] }
 0x502   : > { %p1159_p12 = scmp.ge.s32.totalorder %s1521_s14, 2 }
 0x507   : > { %s915_s11 = sand.u32 1, %s2107_s10   ;;  %p2109_p0 = scmp.ne.s32.totalorder %s2108_s12, 0 }
 0x508   : > { %s916_s24 = scalar_lea.sflag [#allocation11], %s915_s11 }
 0x509   : > { %p1155_p13 = pnand %p1159_p12, %p2109_p0 }
 0x50b   : > { %1468 = dma.done.wait (!%p1155_p13), %s916_s24, 256  }
 0x50c   : > { %1470 = vsyncadd (!%p1155_p13), %s916_s24, 4294967040  ;;  %s27_s14 = sadd.s32 1, %s1521_s14   ;;  %s2111_s9 = sld [smem:[#allocation22_spill]] }
 0x50d   : > { %p1978_p2 = scmp.ge.s32.totalorder %s27_s14, 10   ;;  %s2112_s6 = sld [smem:[#allocation23_spill]] }
 0x50e   : > { %s2113_s11 = sld [smem:[#allocation26_spill]]  ;;  %s2114_s12 = sld [smem:[#allocation27_spill]] }
 0x50f   : > { %s2115_s18 = smov %s2133_s29  ;;  %s2116_s26 = smov %s1477_s27 }
 0x510   : > { %s2117_s27 = smov %s1481_s28  ;;  %s2118_s28 = smov %s1786_s3 }
 0x511   : > { %s2119_s29 = smov %s1489_s30  ;;  %s2120_s30 = smov %s1493_s8 }
 0x512   : > { %s2121_s8 = smov %s1783_s21  ;;  %s2122_s10 = smov %s1517_s13 }
 0x513   : > { %s2123_s13 = smov %s2115_s18  ;;  %26 = sbr.rel (!%p1978_p2) target bundleno = 20 (0x14), region = 122 }
 0x51a   :  { %921 = vsyncpa [#allocation10], 1 }
 0x51b   :  { %923 = vsyncpa [#allocation10 + $0x1], 1 }
 0x51c   :  { %924 = vsyncpa [#allocation13], 1 }
 0x51d   :  { %926 = vsyncpa [#allocation13 + $0x1], 1 }
 0x51e   :  { %927 = vsyncpa [#allocation11], 1 }
 0x51f   :  { %929 = vsyncpa [#allocation11 + $0x1], 1 }

</bundles_post_ra>
